<compile_context>
chip_gen: v7x
topology: tpu7x:2x2x1
jax: 0.10.0
libtpu: 0.0.40
codegen_flags: <defaults>
</compile_context>

<pallas_src>
import jax
import jax.numpy as jnp
from jax import lax
from jax.experimental import pallas as pl
from jax.experimental.pallas import tpu as pltpu

ALPHA = 0.8                    # config['alpha']
SQRT_ALPHA = ALPHA ** 0.5      # folded into Stage-1 normalization
BN_EPS = 1e-5                  # nn.BatchNorm1d default eps
NORM_EPS = 1e-12               # F.normalize default eps
_VMEM_LIMIT = 48 * 1024 * 1024  # safe on v5e/v6e (128 MiB) and v7x (64 MiB physical)


def _round_up(n, m):
    return ((n + m - 1) // m) * m


def _pad2d(a, rows, cols):
    return jnp.pad(a, ((0, rows - a.shape[0]), (0, cols - a.shape[1])))


def _pick_tile(n_p, max_tile):
    """Largest multiple of 128 that is <= max_tile and divides n_p (n_p % 128 == 0)."""
    t = max(128, (min(max_tile, n_p) // 128) * 128)
    while n_p % t:
        t -= 128
    return t


# ---------------------------------------------------------------------------
# Stage 1: fused  Linear -> (folded BN) -> ReLU -> Linear -> L2 row-normalize
# Tiled over row blocks of N; weights are resident (constant index_map).
# The sqrt(alpha) similarity scale is folded into the normalization multiply.
# ---------------------------------------------------------------------------
def _feature_kernel(x_ref, w1_ref, b1_ref, w2_ref, b2_ref, h_ref):
    # x: (T1, Cin) bf16 ; w1: (Cin, H) bf16 (BN pre-folded) ; biases f32
    h = lax.dot_general(x_ref[...], w1_ref[...],
                        dimension_numbers=(((1,), (0,)), ((), ())),
                        preferred_element_type=jnp.float32)
    h = h + b1_ref[...]              # bias + folded eval-mode BatchNorm
    h = jnp.maximum(h, 0.0)          # ReLU
    # Dropout(0.5): identity in eval mode.
    h = lax.dot_general(h.astype(jnp.bfloat16), w2_ref[...],
                        dimension_numbers=(((1,), (0,)), ((), ())),
                        preferred_element_type=jnp.float32)
    h = h + b2_ref[...]
    # F.normalize(p=2, dim=1): x / max(||x||, eps) == x * rsqrt(max(||x||^2, eps^2)).
    # sqrt(ALPHA) folded in so Stage-2 blend is sim + (1-ALPHA)*adj.
    sumsq = jnp.sum(h * h, axis=1, keepdims=True)
    inv = lax.rsqrt(jnp.maximum(sumsq, NORM_EPS * NORM_EPS)) * SQRT_ALPHA
    h_ref[...] = (h * inv).astype(h_ref.dtype)       # bf16 scaled features out


# ---------------------------------------------------------------------------
# Stage 2: tiled similarity + adjacency blend over a 2-D (N, N) grid.
# ---------------------------------------------------------------------------
def _sim_blend_kernel(hr_ref, hc_ref, adj_ref, out_ref):
    # sim tile = (sqrt(a) h_rows) @ (sqrt(a) h_cols)^T  -- contraction on the last dim
    # of both operands, so the MXU consumes the "transposed" operand directly.
    sim = lax.dot_general(hr_ref[...], hc_ref[...],
                          dimension_numbers=(((1,), (1,)), ((), ())),
                          preferred_element_type=jnp.float32)
    # adj streamed as bf16 (traffic win); upcast for the f32 epilogue FMA.
    out_ref[...] = (sim + (1.0 - ALPHA) * adj_ref[...].astype(jnp.float32)
                    ).astype(out_ref.dtype)


def enhanced_gsl(x, adj, params, *, tile=1024, tile_rows=256, out_dtype=jnp.float32):
    """x: (N, Cin) f32, adj: (N, N) f32, params: dict of f32 arrays (W stored (in, out))."""
    N, cin = x.shape
    hidden = params["w2"].shape[1]

    cin_p = _round_up(cin, 128)                 # lane-dense feature dims
    h_p = _round_up(hidden, 128)
    n_p = _round_up(N, 128)                     # pad waste capped at 127 rows
    t1 = _pick_tile(n_p, tile_rows)             # Stage-1 row tile (>=2 blocks when n_p>=512)
    t2 = _pick_tile(n_p, tile)                  # Stage-2 tile (divides n_p exactly)

    # Fold eval-mode BatchNorm1d into the first Linear (one-time param transform).
    scale = params["gamma"] * lax.rsqrt(params["running_var"] + BN_EPS)     # (1, H)
    w1_f = params["w1"] * scale
    b1_f = (params["b1"] - params["running_mean"]) * scale + params["beta"]

    # Zero-pad to aligned shapes; cast matmul operands (and adj) to bf16.
    x_p = _pad2d(x, n_p, cin_p).astype(jnp.bfloat16)
    adj_p = _pad2d(adj, n_p, n_p).astype(jnp.bfloat16)    # exact for 0/1 adjacency
    w1_p = _pad2d(w1_f, cin_p, h_p).astype(jnp.bfloat16)
    b1_p = _pad2d(b1_f, 1, h_p).astype(jnp.float32)
    w2_p = _pad2d(params["w2"], h_p, h_p).astype(jnp.bfloat16)
    b2_p = _pad2d(params["b2"], 1, h_p).astype(jnp.float32)

    # ---- Stage 1: normalized (sqrt(alpha)-scaled) node features, tiled over rows ----
    h_bf16 = pl.pallas_call(
        _feature_kernel,
        out_shape=jax.ShapeDtypeStruct((n_p, h_p), jnp.bfloat16),
        grid_spec=pltpu.PrefetchScalarGridSpec(
            num_scalar_prefetch=0,
            grid=(n_p // t1,),
            in_specs=[
                pl.BlockSpec((t1, cin_p), lambda i: (i, 0)),
                pl.BlockSpec((cin_p, h_p), lambda i: (0, 0)),
                pl.BlockSpec((1, h_p), lambda i: (0, 0)),
                pl.BlockSpec((h_p, h_p), lambda i: (0, 0)),
                pl.BlockSpec((1, h_p), lambda i: (0, 0)),
            ],
            out_specs=pl.BlockSpec((t1, h_p), lambda i: (i, 0)),
        ),
        compiler_params=pltpu.CompilerParams(
            dimension_semantics=("parallel",),
            vmem_limit_bytes=_VMEM_LIMIT),
    )(x_p, w1_p, b1_p, w2_p, b2_p)

    # ---- Stage 2: 2-D tiled similarity + adjacency blend ----
    out_p = pl.pallas_call(
        _sim_blend_kernel,
        out_shape=jax.ShapeDtypeStruct((n_p, n_p), out_dtype),
        grid_spec=pltpu.PrefetchScalarGridSpec(
            num_scalar_prefetch=0,
            grid=(n_p // t2, n_p // t2),
            in_specs=[
                pl.BlockSpec((t2, h_p), lambda i, j: (i, 0)),   # h row block
                pl.BlockSpec((t2, h_p), lambda i, j: (j, 0)),   # h col block
                pl.BlockSpec((t2, t2), lambda i, j: (i, j)),    # adj tile (bf16)
            ],
            out_specs=pl.BlockSpec((t2, t2), lambda i, j: (i, j)),
        ),
        compiler_params=pltpu.CompilerParams(
            dimension_semantics=("parallel", "parallel"),
            vmem_limit_bytes=_VMEM_LIMIT),
    )(h_bf16, h_bf16, adj_p)

    return out_p[:N, :N]


# ---------------------------------------------------------------------------
# Parameters / references / test
# ---------------------------------------------------------------------------
def init_params(key, in_channel, hidden_channel):
    """Deterministic synthetic parameters (shapes match the PyTorch module; W stored (in, out))."""
    k1, k2, k3, k4, k5, k6, k7, k8 = jax.random.split(key, 8)
    return {
        "w1": jax.random.normal(k1, (in_channel, hidden_channel), jnp.float32) * 0.1,
        "b1": jax.random.normal(k2, (1, hidden_channel), jnp.float32) * 0.1,
        "gamma": jnp.ones((1, hidden_channel), jnp.float32)
                 + 0.05 * jax.random.normal(k3, (1, hidden_channel), jnp.float32),
        "beta": 0.05 * jax.random.normal(k4, (1, hidden_channel), jnp.float32),
        "running_mean": 0.1 * jax.random.normal(k5, (1, hidden_channel), jnp.float32),
        "running_var": jnp.ones((1, hidden_channel), jnp.float32)
                       + 0.05 * jnp.abs(jax.random.normal(k6, (1, hidden_channel), jnp.float32)),
        "w2": jax.random.normal(k7, (hidden_channel, hidden_channel), jnp.float32) * 0.1,
        "b2": 0.05 * jax.random.normal(k8, (1, hidden_channel), jnp.float32),
    }


def reference_bf16(x, adj, p):
    """JAX reference mirroring the kernel's bf16-operand / f32-accumulate arithmetic."""
    scale = p["gamma"] * lax.rsqrt(p["running_var"] + BN_EPS)
    w1f = (p["w1"] * scale).astype(jnp.bfloat16)
    b1f = (p["b1"] - p["running_mean"]) * scale + p["beta"]
    h = jnp.dot(x.astype(jnp.bfloat16), w1f, preferred_element_type=jnp.float32) + b1f
    h = jnp.maximum(h, 0.0)
    h = jnp.dot(h.astype(jnp.bfloat16), p["w2"].astype(jnp.bfloat16),
                preferred_element_type=jnp.float32) + p["b2"]
    inv = lax.rsqrt(jnp.maximum(jnp.sum(h * h, axis=1, keepdims=True),
                                NORM_EPS * NORM_EPS)) * SQRT_ALPHA
    hn = (h * inv).astype(jnp.bfloat16)
    sim = jnp.dot(hn, hn.T, preferred_element_type=jnp.float32)
    return sim + (1.0 - ALPHA) * adj.astype(jnp.bfloat16).astype(jnp.float32)


def reference_f32(x, adj, p):
    """Exact eval-mode semantics of the PyTorch module, full f32."""
    h = x @ p["w1"] + p["b1"]
    h = (h - p["running_mean"]) * p["gamma"] / jnp.sqrt(p["running_var"] + BN_EPS) + p["beta"]
    h = jnp.maximum(h, 0.0)
    h = h @ p["w2"] + p["b2"]
    norm = jnp.sqrt(jnp.sum(h * h, axis=1, keepdims=True))
    h = h / jnp.maximum(norm, NORM_EPS)
    sim = h @ h.T
    return ALPHA * sim + (1 - ALPHA) * adj


if __name__ == "__main__":
    N = 24        # number of nodes (deliberately not 128-aligned; exercises padding)
    IN_CH = 16    # in_channel
    HIDDEN = 64   # hidden_channel

    key = jax.random.PRNGKey(0)
    kx, ka, kp = jax.random.split(key, 3)

    x = jax.random.normal(kx, (N, IN_CH), jnp.float32)
    # symmetric 0/1 adjacency with self loops (exactly representable in bf16)
    adj_raw = (jax.random.uniform(ka, (N, N)) > 0.5).astype(jnp.float32)
    adj = jnp.clip(adj_raw + adj_raw.T + jnp.eye(N, dtype=jnp.float32), 0.0, 1.0)

    params = init_params(kp, IN_CH, HIDDEN)

    out = jax.block_until_ready(enhanced_gsl(x, adj, params))
    assert out.shape == (N, N)

    ref_b = reference_bf16(x, adj, params)     # same arithmetic as the kernel
    ref_f = reference_f32(x, adj, params)      # original f32 module semantics
    err_b = float(jnp.max(jnp.abs(out - ref_b)))
    err_f = float(jnp.max(jnp.abs(out - ref_f)))
    assert err_b < 2e-3, f"mismatch vs bf16-matched reference: {err_b}"
    assert err_f < 1e-1, f"mismatch vs f32 reference: {err_f}"

    print("KERNEL_OK")
</pallas_src>

<mosaic_0001>
module attributes {stable_mosaic.version = 11 : i64} {
  func.func @_feature_kernel(%arg0: i32, %arg1: memref<128x128xbf16, #tpu.memory_space<vmem>>, %arg2: memref<128x128xbf16, #tpu.memory_space<vmem>>, %arg3: memref<1x128xf32, #tpu.memory_space<vmem>>, %arg4: memref<128x128xbf16, #tpu.memory_space<vmem>>, %arg5: memref<1x128xf32, #tpu.memory_space<vmem>>, %arg6: memref<128x128xbf16, #tpu.memory_space<vmem>>) attributes {dimension_semantics = [#tpu.dimension_semantics<parallel>], iteration_bounds = array<i64: 1>, scalar_prefetch = 0 : i64, scratch_operands = 0 : i64, tpu.core_type = #tpu.core_type<tc>, window_params = [{transform_indices = @transform_0, window_bounds = array<i64: 128, 128>}, {pipeline_mode = #tpu.pipeline_mode<synchronous>, transform_indices = @transform_1, window_bounds = array<i64: 128, 128>}, {pipeline_mode = #tpu.pipeline_mode<synchronous>, transform_indices = @transform_2, window_bounds = array<i64: 1, 128>}, {pipeline_mode = #tpu.pipeline_mode<synchronous>, transform_indices = @transform_3, window_bounds = array<i64: 128, 128>}, {pipeline_mode = #tpu.pipeline_mode<synchronous>, transform_indices = @transform_4, window_bounds = array<i64: 1, 128>}, {transform_indices = @transform_5, window_bounds = array<i64: 128, 128>}]} {
    %c0 = arith.constant 0 : index
    %c0_0 = arith.constant 0 : index
    %0 = vector.load %arg1[%c0, %c0_0] : memref<128x128xbf16, #tpu.memory_space<vmem>>, vector<128x128xbf16>
    %c0_1 = arith.constant 0 : index
    %c0_2 = arith.constant 0 : index
    %1 = vector.load %arg2[%c0_1, %c0_2] : memref<128x128xbf16, #tpu.memory_space<vmem>>, vector<128x128xbf16>
    %cst = arith.constant dense<0.000000e+00> : vector<128x128xf32>
    %2 = tpu.matmul %0, %1, %cst {dimension_numbers = #tpu.dot_dimension_numbers<[1], [0], [0], [1], [0, 0, 1, 1], [], []>} : vector<128x128xbf16>, vector<128x128xbf16>, vector<128x128xf32> -> vector<128x128xf32>
    %c0_3 = arith.constant 0 : index
    %c0_4 = arith.constant 0 : index
    %3 = vector.load %arg3[%c0_3, %c0_4] : memref<1x128xf32, #tpu.memory_space<vmem>>, vector<1x128xf32>
    %4 = vector.broadcast %3 : vector<1x128xf32> to vector<128x128xf32>
    %5 = arith.addf %2, %4 : vector<128x128xf32>
    %cst_5 = arith.constant 0.000000e+00 : f32
    %6 = vector.broadcast %cst_5 : f32 to vector<128x128xf32>
    %7 = arith.maximumf %5, %6 : vector<128x128xf32>
    %8 = arith.truncf %7 : vector<128x128xf32> to vector<128x128xbf16>
    %c0_6 = arith.constant 0 : index
    %c0_7 = arith.constant 0 : index
    %9 = vector.load %arg4[%c0_6, %c0_7] : memref<128x128xbf16, #tpu.memory_space<vmem>>, vector<128x128xbf16>
    %cst_8 = arith.constant dense<0.000000e+00> : vector<128x128xf32>
    %10 = tpu.matmul %8, %9, %cst_8 {dimension_numbers = #tpu.dot_dimension_numbers<[1], [0], [0], [1], [0, 0, 1, 1], [], []>} : vector<128x128xbf16>, vector<128x128xbf16>, vector<128x128xf32> -> vector<128x128xf32>
    %c0_9 = arith.constant 0 : index
    %c0_10 = arith.constant 0 : index
    %11 = vector.load %arg5[%c0_9, %c0_10] : memref<1x128xf32, #tpu.memory_space<vmem>>, vector<1x128xf32>
    %12 = vector.broadcast %11 : vector<1x128xf32> to vector<128x128xf32>
    %13 = arith.addf %10, %12 : vector<128x128xf32>
    %14 = arith.mulf %13, %13 : vector<128x128xf32>
    %cst_11 = arith.constant dense<0.000000e+00> : vector<128xf32>
    %15 = vector.multi_reduction <add>, %14, %cst_11 [1] : vector<128x128xf32> to vector<128xf32>
    %16 = vector.shape_cast %15 : vector<128xf32> to vector<128x1xf32>
    %cst_12 = arith.constant 1.000000e-24 : f32
    %17 = vector.broadcast %cst_12 : f32 to vector<128x1xf32>
    %18 = arith.maximumf %16, %17 : vector<128x1xf32>
    %19 = math.rsqrt %18 : vector<128x1xf32>
    %cst_13 = arith.constant 0.89442718 : f32
    %20 = vector.broadcast %cst_13 : f32 to vector<128x1xf32>
    %21 = arith.mulf %19, %20 : vector<128x1xf32>
    %22 = vector.broadcast %21 : vector<128x1xf32> to vector<128x128xf32>
    %23 = arith.mulf %13, %22 : vector<128x128xf32>
    %24 = arith.truncf %23 : vector<128x128xf32> to vector<128x128xbf16>
    %c0_14 = arith.constant 0 : index
    %c0_15 = arith.constant 0 : index
    %25 = vector.load %arg6[%c0_14, %c0_15] : memref<128x128xbf16, #tpu.memory_space<vmem>>, vector<128x128xbf16>
    tpu.vector_store %arg6[%c0_14, %c0_15], %24 {strides = array<i32>} : memref<128x128xbf16, #tpu.memory_space<vmem>>, vector<128x128xbf16>,
    return
  }
  func.func @transform_0(%arg0: i32) -> (i32, i32) {
    %c0_i32 = arith.constant 0 : i32
    %c0_i32_0 = arith.constant 0 : i32
    return %arg0, %c0_i32 : i32, i32
  }
  func.func @transform_1(%arg0: i32) -> (i32, i32) {
    %c0_i32 = arith.constant 0 : i32
    %c0_i32_0 = arith.constant 0 : i32
    %c0_i32_1 = arith.constant 0 : i32
    return %c0_i32, %c0_i32_0 : i32, i32
  }
  func.func @transform_2(%arg0: i32) -> (i32, i32) {
    %c0_i32 = arith.constant 0 : i32
    %c0_i32_0 = arith.constant 0 : i32
    %c0_i32_1 = arith.constant 0 : i32
    return %c0_i32, %c0_i32_0 : i32, i32
  }
  func.func @transform_3(%arg0: i32) -> (i32, i32) {
    %c0_i32 = arith.constant 0 : i32
    %c0_i32_0 = arith.constant 0 : i32
    %c0_i32_1 = arith.constant 0 : i32
    return %c0_i32, %c0_i32_0 : i32, i32
  }
  func.func @transform_4(%arg0: i32) -> (i32, i32) {
    %c0_i32 = arith.constant 0 : i32
    %c0_i32_0 = arith.constant 0 : i32
    %c0_i32_1 = arith.constant 0 : i32
    return %c0_i32, %c0_i32_0 : i32, i32
  }
  func.func @transform_5(%arg0: i32) -> (i32, i32) {
    %c0_i32 = arith.constant 0 : i32
    %c0_i32_0 = arith.constant 0 : i32
    return %arg0, %c0_i32 : i32, i32
  }
}

</mosaic_0001>

<bundles_post_ra>
// kernel: tpu_custom_call.1
= control target key start
LH: loop header
LB: loop body
LE: loop exit
PB: predicated region body
PF: predicated region fallthrough
CT: control target
= control target key end

     0   :  { %10 = vsyncpa [#allocation3], 0  ;;  %s1243_s0 = inlined_call_operand.hbm [shape: bf16[128,128], index: 0, kind: input, shape index: {}]   ;;  %s1244_s1 = inlined_call_operand.hbm [shape: bf16[128,128], index: 1, kind: input, shape index: {}]   ;;  %s1245_s2 = inlined_call_operand.vmem [shape: f32[1,128], index: 2, kind: input, shape index: {}]   ;;  %s1246_s3 = inlined_call_operand.hbm [shape: bf16[128,128], index: 3, kind: input, shape index: {}]   ;;  %s1247_s4 = inlined_call_operand.vmem [shape: f32[1,128], index: 4, kind: input, shape index: {}]   ;;  %s1248_s5 = inlined_call_operand.hbm [shape: bf16[128,128], index: 5, kind: output, shape index: {}]  }
   0x1   :  { %11 = vsyncpa [#allocation6], 0 }
   0x2   :  { %12 = vsyncpa [#allocation4], 0  ;;  %s1054_s18 = smov [#allocation5]   ;;  %s1055_s20 = smov [#allocation2]  }
   0x3   :  { %s30_s19 = sshll.u32 %s1054_s18, 4  ;;  %s18_s21 = sshll.u32 %s1055_s20, 4  ;;  %s31_s19 = int_to_ptr.vmem [resolvable:$true] %s30_s19  ;;  %s1090_s21 = int_to_ptr.vmem [resolvable:$true] %s18_s21 }
   0x4   :  { %s960_s24 = scalar_lea.hbm %s1244_s1, 1024 }
   0x5   :  { %p961_p0 = scmp.ne.s32.totalorder %s1244_s1, %s960_s24  ;;  %p964_p1 = scmp.lt.u32.totalorder %s960_s24, %s1244_s1 }
   0x7   :  { %p966_p2 = pnand %p964_p1, %p961_p0 }
   0x9   :  { %969 = shalt.err (!%p966_p2)
}
   0xa   :  { %s970_s29 = scalar_lea.vmem %s31_s19, 1024  ;;  %p975_p4 = scmp.lt.s32.totalorder %s31_s19, %s31_s19 }
   0xb   :  { %p971_p3 = scmp.ne.s32.totalorder %s31_s19, %s970_s29  ;;  %p976_p5 = scmp.lt.s32.totalorder %s970_s29, %s970_s29 }
   0xd   :  { %p977_p6 = por %p976_p5, %p975_p4 }
   0xf   :  { %p978_p7 = pnand %p977_p6, %p971_p3 }
  0x11   :  { %981 = shalt.err (!%p978_p7)
}
  0x12   :  { %s1056_s30 = smov 64   ;;  %s1057_s6 = smov 4  }
  0x13   :  { %36 = dma.hbm_to_vmem [thread:$0]  %s1244_s1, 1024, %s31_s19, [#allocation6], %s1056_s30, %s1056_s30, %s1057_s6  }
  0x14   :  { %s982_s11 = scalar_lea.hbm %s1243_s0, 1024 }
  0x15   :  { %p983_p8 = scmp.ne.s32.totalorder %s1243_s0, %s982_s11  ;;  %p986_p9 = scmp.lt.u32.totalorder %s982_s11, %s1243_s0 }
  0x17   :  { %p988_p10 = pnand %p986_p9, %p983_p8 }
  0x19   :  { %991 = shalt.err (!%p988_p10)
}
  0x1a   :  { %s992_s16 = scalar_lea.vmem %s1090_s21, 1024  ;;  %p997_p12 = scmp.lt.s32.totalorder %s1090_s21, %s1090_s21 }
  0x1b   :  { %p993_p11 = scmp.ne.s32.totalorder %s1090_s21, %s992_s16  ;;  %p998_p13 = scmp.lt.s32.totalorder %s992_s16, %s992_s16 }
  0x1d   :  { %p999_p0 = por %p998_p13, %p997_p12 }
  0x1f   :  { %p1000_p1 = pnand %p999_p0, %p993_p11 }
  0x21   :  { %1003 = shalt.err (!%p1000_p1)
}
  0x22   :  { %24 = dma.hbm_to_vmem [thread:$0]  %s1243_s0, 1024, %s1090_s21, [#allocation3], %s1056_s30, %s1056_s30, %s1057_s6  }
  0x23   :  { %s1058_s18 = smov [#allocation7]   ;;  %s1004_s23 = scalar_lea.hbm %s1246_s3, 1024 }
  0x24   :  { %s44_s19 = sshll.u32 %s1058_s18, 4  ;;  %p1005_p2 = scmp.ne.s32.totalorder %s1246_s3, %s1004_s23  ;;  %s45_s19 = int_to_ptr.vmem [resolvable:$true] %s44_s19 }
  0x25   :  { %p1008_p3 = scmp.lt.u32.totalorder %s1004_s23, %s1246_s3 }
  0x27   :  { %p1010_p4 = pnand %p1008_p3, %p1005_p2 }
  0x29   :  { %1013 = shalt.err (!%p1010_p4)
}
  0x2a   :  { %s1014_s28 = scalar_lea.vmem %s45_s19, 1024  ;;  %p1019_p6 = scmp.lt.s32.totalorder %s45_s19, %s45_s19 }
  0x2b   :  { %p1015_p5 = scmp.ne.s32.totalorder %s45_s19, %s1014_s28  ;;  %p1020_p7 = scmp.lt.s32.totalorder %s1014_s28, %s1014_s28 }
  0x2d   :  { %p1021_p8 = por %p1020_p7, %p1019_p6 }
  0x2f   :  { %p1022_p9 = pnand %p1021_p8, %p1015_p5 }
  0x31   :  { %1025 = shalt.err (!%p1022_p9)
}
  0x32   :  { %50 = dma.hbm_to_vmem [thread:$0]  %s1246_s3, 1024, %s45_s19, [#allocation6], %s1056_s30, %s1056_s30, %s1057_s6  }
  0x33   :  { %1048 = dma.done.wait [#allocation3], 1024  }
  0x34   :  { %1049 = vsyncadd [#allocation3], 4294966272 }
  0x35   :  { %1050 = dma.done.wait [#allocation6], 2048  }
  0x36   :  { %1051 = vsyncadd [#allocation6], 4294965248  ;;  %v904_v0 = vld [vmem:[#allocation5] sm:$0xff]   ;;  %v905_v1 = vld [vmem:[#allocation5 + $0x8] sm:$0xff]  }
  0x37   :  { %834 = vmatprep.subr.bf16.mxu0 %v904_v0  ;;  %v906_v2 = vld [vmem:[#allocation5 + $0x10] sm:$0xff]   ;;  %v907_v3 = vld [vmem:[#allocation5 + $0x18] sm:$0xff]   ;;  %v912_v4 = vld [vmem:[#allocation2] sm:$0xff]  }
  0x38   :  { %835 = vmatpush3.bf16.msra.mxu0 %v904_v0  ;;  %850 = vmatprep.mubr.bf16.mxu0 %v912_v4  ;;  %v908_v5 = vld [vmem:[#allocation5 + $0x20] sm:$0xff]   ;;  %v909_v6 = vld [vmem:[#allocation5 + $0x28] sm:$0xff]   ;;  %v910_v9 = vld [vmem:[#allocation5 + $0x30] sm:$0xff]  }
  0x39   :  { %836 = vmatprep.subr.bf16.mxu0 %v905_v1  ;;  %v920_v7 = vld [vmem:[#allocation7] sm:$0xff]   ;;  %v921_v8 = vld [vmem:[#allocation7 + $0x8] sm:$0xff]   ;;  %v922_v10 = vld [vmem:[#allocation7 + $0x10] sm:$0xff]  }
  0x3a   :  { %866 = vmatprep.subr.bf16.mxu1 %v920_v7  ;;  %v911_v11 = vld [vmem:[#allocation5 + $0x38] sm:$0xff]   ;;  %v924_v13 = vld [vmem:[#allocation7 + $0x20] sm:$0xff]   ;;  %v913_v14 = vld [vmem:[#allocation2 + $0x8] sm:$0xff]  }
  0x3b   :  { %867 = vmatpush3.bf16.msra.mxu1 %v920_v7  ;;  %v923_v12 = vld [vmem:[#allocation7 + $0x18] sm:$0xff]   ;;  %v914_v15 = vld [vmem:[#allocation2 + $0x10] sm:$0xff]   ;;  %v925_v16 = vld [vmem:[#allocation7 + $0x28] sm:$0xff]  }
  0x3c   :  { %837 = vmatpush3.bf16.msra.mxu0 %v905_v1  ;;  %868 = vmatprep.subr.bf16.mxu1 %v921_v8  ;;  %v915_v17 = vld [vmem:[#allocation2 + $0x18] sm:$0xff]   ;;  %v916_v18 = vld [vmem:[#allocation2 + $0x20] sm:$0xff]   ;;  %v917_v19 = vld [vmem:[#allocation2 + $0x28] sm:$0xff]  }
  0x3d   :  { %838 = vmatprep.subr.bf16.mxu0 %v906_v2  ;;  %v918_v20 = vld [vmem:[#allocation2 + $0x30] sm:$0xff]   ;;  %v919_v21 = vld [vmem:[#allocation2 + $0x38] sm:$0xff]   ;;  %v697_v24 = vld [vmem:[%s1245_s2] ss:$0 sm:$0xff] }
  0x3e   :  { %v926_v22 = vld [vmem:[#allocation7 + $0x30] sm:$0xff]   ;;  %v927_v23 = vld [vmem:[#allocation7 + $0x38] sm:$0xff]  }
  0x3f   :  { %869 = vmatpush3.bf16.msra.mxu1 %v921_v8 }
  0x40   :  { %839 = vmatpush3.bf16.msra.mxu0 %v906_v2  ;;  %870 = vmatprep.subr.bf16.mxu1 %v922_v10 }
  0x41   :  { %840 = vmatprep.subr.bf16.mxu0 %v907_v3 }
  0x43   :  { %871 = vmatpush3.bf16.msra.mxu1 %v922_v10 }
  0x44   :  { %841 = vmatpush3.bf16.msra.mxu0 %v907_v3  ;;  %872 = vmatprep.subr.bf16.mxu1 %v923_v12 }
  0x45   :  { %842 = vmatprep.subr.bf16.mxu0 %v908_v5 }
  0x47   :  { %873 = vmatpush3.bf16.msra.mxu1 %v923_v12 }
  0x48   :  { %843 = vmatpush3.bf16.msra.mxu0 %v908_v5  ;;  %874 = vmatprep.subr.bf16.mxu1 %v924_v13 }
  0x49   :  { %844 = vmatprep.subr.bf16.mxu0 %v909_v6 }
  0x4b   :  { %875 = vmatpush3.bf16.msra.mxu1 %v924_v13 }
  0x4c   :  { %845 = vmatpush3.bf16.msra.mxu0 %v909_v6  ;;  %876 = vmatprep.subr.bf16.mxu1 %v925_v16 }
  0x4d   :  { %846 = vmatprep.subr.bf16.mxu0 %v910_v9 }
  0x4f   :  { %877 = vmatpush3.bf16.msra.mxu1 %v925_v16 }
  0x50   :  { %847 = vmatpush3.bf16.msra.mxu0 %v910_v9  ;;  %878 = vmatprep.subr.bf16.mxu1 %v926_v22 }
  0x51   :  { %848 = vmatprep.subr.bf16.mxu0 %v911_v11 }
  0x53   :  { %879 = vmatpush3.bf16.msra.mxu1 %v926_v22 }
  0x54   :  { %849 = vmatpush3.bf16.msra.mxu0 %v911_v11  ;;  %880 = vmatprep.subr.bf16.mxu1 %v927_v23 }
  0x57   :  { %851 = vmatmul.mubr.bf16.vlgmr.msra.gmra.mrb[0].mxu0 %v913_v14  ;;  %881 = vmatpush3.bf16.msra.mxu1 %v927_v23 }
  0x58   :  { %854 = vmatprep.mubr.bf16.mxu0 %v914_v15 }
  0x5f   :  { %855 = vmatmul.mubr.bf16.gmra.mrb[4].mxu0 %v915_v17  ;;  %v714_v17 = vld [vmem:[%s1247_s4] ss:$0 sm:$0xff]  ;;  %s1059_s4 = smov [#allocation8]  }
  0x60   :  { %858 = vmatprep.mubr.bf16.mxu0 %v916_v18  ;;  %s684_s8 = sshll.u32 %s1059_s4, 4  ;;  %s685_s8 = int_to_ptr.vmem [resolvable:$true] %s684_s8 }
  0x61   :  { %s1026_s9 = scalar_lea.vmem %s685_s8, 1024  ;;  %p1031_p11 = scmp.lt.s32.totalorder %s685_s8, %s685_s8 }
  0x62   :  { %p1027_p10 = scmp.ne.s32.totalorder %s685_s8, %s1026_s9  ;;  %p1032_p12 = scmp.lt.s32.totalorder %s1026_s9, %s1026_s9 }
  0x64   :  { %p1033_p13 = por %p1032_p12, %p1031_p11 }
  0x66   :  { %p1034_p0 = pnand %p1033_p13, %p1027_p10 }
  0x67   :  { %859 = vmatmul.mubr.bf16.gmra.mrb[8].mxu0 %v917_v19 }
  0x68   :  { %862 = vmatprep.mubr.bf16.mxu0 %v918_v20 }
  0x6f   :  { %863 = vmatmul.mubr.bf16.gmra.mrb[12].mxu0 %v919_v21 }
 0x12a   :  { %v852_v25 = vpop.f32.mrb[0].mxu0 }
 0x12b   :  { %v241_v26 = vadd.f32 %v852_v25, %v697_v24  ;;  %v232_v27 = vpop.f32.mrb[1].mxu0 }
 0x12c   :  { %v233_v28 = vadd.f32 %v697_v24, %v232_v27  ;;  %v853_v29 = vpop.f32.mrb[2].mxu0 }
 0x12d   :  { %v244_v30 = vadd.f32 %v853_v29, %v697_v24  ;;  %v235_v31 = vpop.f32.mrb[3].mxu0  ;;  %v297_v33 = vmax.f32 %v241_v26, 0.0 }
 0x12e   :  { %v236_v32 = vadd.f32 %v697_v24, %v235_v31  ;;  %v295_v35 = vmax.f32 %v233_v28, 0.0 }
 0x12f   :  { %v298_v34 = vmax.f32 %v244_v30, 0.0 }
 0x130   :  { %v296_v36 = vmax.f32 %v236_v32, 0.0 }
 0x131   :  { %v312_v37 = vpack.c.bf16 %v298_v34, %v297_v33 }
 0x132   :  { %v856_v38 = vpop.f32.mrb[4].mxu0  ;;  %v311_v39 = vpack.c.bf16 %v296_v36, %v295_v35 }
 0x133   :  { %v257_v40 = vadd.f32 %v856_v38, %v697_v24  ;;  %v248_v41 = vpop.f32.mrb[5].mxu0 }
 0x134   :  { %v249_v42 = vadd.f32 %v697_v24, %v248_v41  ;;  %v857_v43 = vpop.f32.mrb[6].mxu0  ;;  %882 = vmatprep.mubr.bf16.mxu1 %v311_v39 }
 0x135   :  { %v260_v44 = vadd.f32 %v857_v43, %v697_v24  ;;  %v251_v45 = vpop.f32.mrb[7].mxu0  ;;  %883 = vmatmul.mubr.bf16.vlgmr.msra.gmra.mrb[0].mxu1 %v312_v37  ;;  %v301_v47 = vmax.f32 %v257_v40, 0.0 }
 0x136   :  { %v252_v46 = vadd.f32 %v697_v24, %v251_v45  ;;  %v299_v49 = vmax.f32 %v249_v42, 0.0 }
 0x137   :  { %v302_v48 = vmax.f32 %v260_v44, 0.0 }
 0x138   :  { %v300_v50 = vmax.f32 %v252_v46, 0.0 }
 0x139   :  { %v314_v51 = vpack.c.bf16 %v302_v48, %v301_v47 }
 0x13a   :  { %v313_v52 = vpack.c.bf16 %v300_v50, %v299_v49  ;;  %v860_v53 = vpop.f32.mrb[8].mxu0 }
 0x13b   :  { %v273_v54 = vadd.f32 %v860_v53, %v697_v24  ;;  %v264_v55 = vpop.f32.mrb[9].mxu0 }
 0x13c   :  { %v265_v56 = vadd.f32 %v697_v24, %v264_v55  ;;  %v861_v57 = vpop.f32.mrb[10].mxu0  ;;  %886 = vmatprep.mubr.bf16.mxu1 %v313_v52 }
 0x13d   :  { %v276_v58 = vadd.f32 %v861_v57, %v697_v24  ;;  %v267_v59 = vpop.f32.mrb[11].mxu0  ;;  %887 = vmatmul.mubr.bf16.gmra.mrb[4].mxu1 %v314_v51  ;;  %v305_v61 = vmax.f32 %v273_v54, 0.0 }
 0x13e   :  { %v268_v60 = vadd.f32 %v697_v24, %v267_v59  ;;  %v303_v63 = vmax.f32 %v265_v56, 0.0 }
 0x13f   :  { %v306_v62 = vmax.f32 %v276_v58, 0.0 }
 0x140   :  { %v304_v0 = vmax.f32 %v268_v60, 0.0 }
 0x141   :  { %v316_v1 = vpack.c.bf16 %v306_v62, %v305_v61 }
 0x142   :  { %v315_v2 = vpack.c.bf16 %v304_v0, %v303_v63  ;;  %v864_v3 = vpop.f32.mrb[12].mxu0 }
 0x143   :  { %v289_v4 = vadd.f32 %v864_v3, %v697_v24  ;;  %v280_v5 = vpop.f32.mrb[13].mxu0 }
 0x144   :  { %v281_v6 = vadd.f32 %v697_v24, %v280_v5  ;;  %v865_v7 = vpop.f32.mrb[14].mxu0  ;;  %890 = vmatprep.mubr.bf16.mxu1 %v315_v2 }
 0x145   :  { %v292_v8 = vadd.f32 %v865_v7, %v697_v24  ;;  %v283_v9 = vpop.f32.mrb[15].mxu0  ;;  %891 = vmatmul.mubr.bf16.gmra.mrb[8].mxu1 %v316_v1  ;;  %v309_v11 = vmax.f32 %v289_v4, 0.0 }
 0x146   :  { %v284_v10 = vadd.f32 %v697_v24, %v283_v9  ;;  %v307_v13 = vmax.f32 %v281_v6, 0.0 }
 0x147   :  { %v310_v12 = vmax.f32 %v292_v8, 0.0 }
 0x148   :  { %v308_v14 = vmax.f32 %v284_v10, 0.0 }
 0x149   :  { %v318_v15 = vpack.c.bf16 %v310_v12, %v309_v11 }
 0x14a   :  { %v317_v16 = vpack.c.bf16 %v308_v14, %v307_v13 }
 0x14c   :  { %894 = vmatprep.mubr.bf16.mxu1 %v317_v16 }
 0x14d   :  { %895 = vmatmul.mubr.bf16.gmra.mrb[12].mxu1 %v318_v15 }
 0x208   :  { %v884_v18 = vpop.f32.mrb[0].mxu1 }
 0x209   :  { %v1148_v19 = vadd.f32 %v884_v18, %v714_v17  ;;  %v424_v20 = vpop.f32.mrb[1].mxu1 }
 0x20a   :  { %v1150_v21 = vadd.f32 %v714_v17, %v424_v20  ;;  %v885_v22 = vpop.f32.mrb[2].mxu1 }
 0x20b   :  { %v1152_v23 = vadd.f32 %v885_v22, %v714_v17  ;;  %v427_v24 = vpop.f32.mrb[3].mxu1  ;;  %v489_v25 = vmul.f32 %v1148_v19, %v1148_v19 }
 0x20c   :  { %v1156_v26 = vadd.f32 %v714_v17, %v427_v24  ;;  %v487_v27 = vmul.f32 %v1150_v21, %v1150_v21 }
 0x20d   :  { %507 = vadd.xlane.f32.xlu1 %v489_v25  ;;  %v490_v28 = vmul.f32 %v1152_v23, %v1152_v23 }
 0x20e   :  { %503 = vadd.xlane.f32.xlu0 %v487_v27  ;;  %v488_v30 = vmul.f32 %v1156_v26, %v1156_v26 }
 0x210   :  { %v888_v29 = vpop.f32.mrb[4].mxu1 }
 0x211   :  { %v1164_v31 = vadd.f32 %v888_v29, %v714_v17  ;;  %509 = vadd.xlane.f32.xlu1 %v490_v28  ;;  %v440_v32 = vpop.f32.mrb[5].mxu1 }
 0x212   :  { %v889_v33 = vpop.f32.mrb[6].mxu1  ;;  %505 = vadd.xlane.f32.xlu0 %v488_v30  ;;  %v1170_v37 = vadd.f32 %v714_v17, %v440_v32 }
 0x213   :  { %v1166_v34 = vadd.f32 %v889_v33, %v714_v17  ;;  %v443_v35 = vpop.f32.mrb[7].mxu1  ;;  %v493_v36 = vmul.f32 %v1164_v31, %v1164_v31 }
 0x214   :  { %v1172_v38 = vadd.f32 %v714_v17, %v443_v35  ;;  %v491_v41 = vmul.f32 %v1170_v37, %v1170_v37 }
 0x215   :  { %v494_v39 = vmul.f32 %v1166_v34, %v1166_v34 }
 0x216   :  { %515 = vadd.xlane.f32.xlu0 %v493_v36  ;;  %v492_v44 = vmul.f32 %v1172_v38, %v1172_v38 }
 0x217   :  { %517 = vadd.xlane.f32.xlu1 %v494_v39 }
 0x218   :  { %v892_v40 = vpop.f32.mrb[8].mxu1 }
 0x219   :  { %v1178_v42 = vadd.f32 %v892_v40, %v714_v17  ;;  %v456_v43 = vpop.f32.mrb[9].mxu1 }
 0x21a   :  { %v893_v45 = vpop.f32.mrb[10].mxu1  ;;  %511 = vadd.xlane.f32.xlu0 %v491_v41  ;;  %v1186_v49 = vadd.f32 %v714_v17, %v456_v43 }
 0x21b   :  { %v1182_v46 = vadd.f32 %v893_v45, %v714_v17  ;;  %v459_v47 = vpop.f32.mrb[11].mxu1  ;;  %513 = vadd.xlane.f32.xlu1 %v492_v44  ;;  %v497_v48 = vmul.f32 %v1178_v42, %v1178_v42 }
 0x21c   :  { %v1188_v50 = vadd.f32 %v714_v17, %v459_v47  ;;  %v495_v53 = vmul.f32 %v1186_v49, %v1186_v49 }
 0x21d   :  { %v498_v51 = vmul.f32 %v1182_v46, %v1182_v46 }
 0x21e   :  { %523 = vadd.xlane.f32.xlu0 %v497_v48  ;;  %v496_v55 = vmul.f32 %v1188_v50, %v1188_v50 }
 0x21f   :  { %525 = vadd.xlane.f32.xlu1 %v498_v51 }
 0x220   :  { %v896_v52 = vpop.f32.mrb[12].mxu1 }
 0x221   :  { %v472_v54 = vpop.f32.mrb[13].mxu1  ;;  %v1198_v59 = vadd.f32 %v896_v52, %v714_v17 }
 0x222   :  { %v1196_v56 = vadd.f32 %v714_v17, %v472_v54  ;;  %v897_v57 = vpop.f32.mrb[14].mxu1  ;;  %519 = vadd.xlane.f32.xlu0 %v495_v53 }
 0x223   :  { %v475_v58 = vpop.f32.mrb[15].mxu1  ;;  %521 = vadd.xlane.f32.xlu1 %v496_v55  ;;  %v1204_v62 = vadd.f32 %v897_v57, %v714_v17  ;;  %v501_v0 = vmul.f32 %v1198_v59, %v1198_v59 }
 0x224   :  { %v1200_v60 = vadd.f32 %v714_v17, %v475_v58  ;;  %v499_v61 = vmul.f32 %v1196_v56, %v1196_v56 }
 0x225   :  { %v502_v1 = vmul.f32 %v1204_v62, %v1204_v62 }
 0x226   :  { %527 = vadd.xlane.f32.xlu0 %v499_v61  ;;  %v500_v63 = vmul.f32 %v1200_v60, %v1200_v60 }
 0x228   :  { %529 = vadd.xlane.f32.xlu1 %v500_v63 }
 0x22a   :  { %531 = vadd.xlane.f32.xlu0 %v501_v0 }
 0x22c   :  { %533 = vadd.xlane.f32.xlu1 %v502_v1 }
 0x29a   :  { %v508_v2 = vpop.xlane.xlu1 %507 }
 0x29b   :  { %v537_v3 = vmax.f32 %v508_v2, 1e-24  ;;  %v504_v4 = vpop.xlane.xlu0 %503 }
 0x29c   :  { %v535_v5 = vmax.f32 %v504_v4, 1e-24 }
 0x29d   :  { %928 = vrsqrt.f32 %v537_v3 }
 0x29e   :  { %930 = vrsqrt.f32 %v535_v5  ;;  %v510_v6 = vpop.xlane.xlu1 %509 }
 0x29f   :  { %v538_v7 = vmax.f32 %v510_v6, 1e-24  ;;  %v506_v8 = vpop.xlane.xlu0 %505 }
 0x2a0   :  { %v536_v9 = vmax.f32 %v506_v8, 1e-24 }
 0x2a1   :  { %932 = vrsqrt.f32 %v538_v7 }
 0x2a2   :  { %934 = vrsqrt.f32 %v536_v9 }
 0x2a3   :  { %v516_v10 = vpop.xlane.xlu0 %515 }
 0x2a4   :  { %v541_v11 = vmax.f32 %v516_v10, 1e-24  ;;  %v518_v12 = vpop.xlane.xlu1 %517 }
 0x2a5   :  { %v542_v13 = vmax.f32 %v518_v12, 1e-24 }
 0x2a6   :  { %936 = vrsqrt.f32 %v541_v11 }
 0x2a7   :  { %v929_v14 = vpop.eup %928  ;;  %938 = vrsqrt.f32 %v542_v13  ;;  %v512_v15 = vpop.xlane.xlu0 %511 }
 0x2a8   :  { %v931_v16 = vpop.eup %930  ;;  %v539_v17 = vmax.f32 %v512_v15, 1e-24  ;;  %v514_v18 = vpop.xlane.xlu1 %513  ;;  %v569_v22 = vmul.f32 0.8944272, %v929_v14 }
 0x2a9   :  { %v540_v20 = vmax.f32 %v514_v18, 1e-24  ;;  %v567_v25 = vmul.f32 0.8944272, %v931_v16 }
 0x2aa   :  { %940 = vrsqrt.f32 %v539_v17  ;;  %v585_v36 = vmul.f32 %v569_v22, %v1148_v19 }
 0x2ab   :  { %v933_v24 = vpop.eup %932  ;;  %942 = vrsqrt.f32 %v540_v20  ;;  %v524_v27 = vpop.xlane.xlu0 %523  ;;  %v583_v40 = vmul.f32 %v567_v25, %v1150_v21 }
 0x2ac   :  { %v935_v28 = vpop.eup %934  ;;  %v570_v29 = vmul.f32 0.8944272, %v933_v24  ;;  %v545_v30 = vmax.f32 %v524_v27, 1e-24  ;;  %v526_v32 = vpop.xlane.xlu1 %525 }
 0x2ad   :  { %v568_v33 = vmul.f32 0.8944272, %v935_v28  ;;  %v546_v35 = vmax.f32 %v526_v32, 1e-24 }
 0x2ae   :  { %v586_v39 = vmul.f32 %v570_v29, %v1152_v23  ;;  %944 = vrsqrt.f32 %v545_v30 }
 0x2af   :  { %v584_v41 = vmul.f32 %v568_v33, %v1156_v26  ;;  %946 = vrsqrt.f32 %v546_v35  ;;  %v520_v43 = vpop.xlane.xlu0 %519 }
 0x2b0   :  { %v937_v44 = vpop.eup %936  ;;  %v763_v45 = vpack.c.bf16 %v586_v39, %v585_v36  ;;  %v543_v47 = vmax.f32 %v520_v43, 1e-24  ;;  %v522_v48 = vpop.xlane.xlu1 %521 }
 0x2b1   :  { %v939_v51 = vpop.eup %938  ;;  %v758_v52 = vpack.c.bf16 %v584_v41, %v583_v40  ;;  %v573_v53 = vmul.f32 0.8944272, %v937_v44  ;;  %v544_v54 = vmax.f32 %v522_v48, 1e-24 }
 0x2b2   :  { %795 = vst [vmem:[#allocation8 + $0x8] sm:$0xff] %v763_v45   ;;  %v574_v55 = vmul.f32 0.8944272, %v939_v51  ;;  %948 = vrsqrt.f32 %v543_v47 }
 0x2b3   :  { %759 = vst [vmem:[#allocation8] sm:$0xff] %v758_v52   ;;  %v589_v19 = vmul.f32 %v573_v53, %v1164_v31  ;;  %950 = vrsqrt.f32 %v544_v54  ;;  %v528_v21 = vpop.xlane.xlu0 %527 }
 0x2b4   :  { %v941_v23 = vpop.eup %940  ;;  %v590_v26 = vmul.f32 %v574_v55, %v1166_v34  ;;  %v547_v57 = vmax.f32 %v528_v21, 1e-24 }
 0x2b5   :  { %v943_v58 = vpop.eup %942  ;;  %v571_v61 = vmul.f32 0.8944272, %v941_v23  ;;  %v530_v63 = vpop.xlane.xlu1 %529 }
 0x2b6   :  { %v773_v0 = vpack.c.bf16 %v590_v26, %v589_v19  ;;  %v572_v1 = vmul.f32 0.8944272, %v943_v58  ;;  %952 = vrsqrt.f32 %v547_v57  ;;  %v548_v2 = vmax.f32 %v530_v63, 1e-24 }
 0x2b7   :  { %v587_v3 = vmul.f32 %v571_v61, %v1170_v37  ;;  %v532_v4 = vpop.xlane.xlu0 %531 }
 0x2b8   :  { %v945_v5 = vpop.eup %944  ;;  %797 = vst [vmem:[#allocation8 + $0x18] sm:$0xff] %v773_v0   ;;  %v588_v31 = vmul.f32 %v572_v1, %v1172_v38  ;;  %954 = vrsqrt.f32 %v548_v2  ;;  %v549_v6 = vmax.f32 %v532_v4, 1e-24 }
 0x2b9   :  { %v947_v7 = vpop.eup %946  ;;  %v577_v8 = vmul.f32 0.8944272, %v945_v5  ;;  %v534_v34 = vpop.xlane.xlu1 %533 }
 0x2ba   :  { %v768_v9 = vpack.c.bf16 %v588_v31, %v587_v3  ;;  %v578_v10 = vmul.f32 0.8944272, %v947_v7  ;;  %956 = vrsqrt.f32 %v549_v6  ;;  %v550_v11 = vmax.f32 %v534_v34, 1e-24 }
 0x2bb   :  { %v593_v12 = vmul.f32 %v577_v8, %v1178_v42 }
 0x2bc   :  { %v949_v13 = vpop.eup %948  ;;  %796 = vst [vmem:[#allocation8 + $0x10] sm:$0xff] %v768_v9   ;;  %v594_v37 = vmul.f32 %v578_v10, %v1182_v46  ;;  %958 = vrsqrt.f32 %v550_v11 }
 0x2bd   :  { %v951_v14 = vpop.eup %950  ;;  %v575_v15 = vmul.f32 0.8944272, %v949_v13 }
 0x2be   :  { %v783_v16 = vpack.c.bf16 %v594_v37, %v593_v12  ;;  %v576_v38 = vmul.f32 0.8944272, %v951_v14 }
 0x2bf   :  { %v591_v17 = vmul.f32 %v575_v15, %v1186_v49 }
 0x2c0   :  { %v953_v18 = vpop.eup %952  ;;  %799 = vst [vmem:[#allocation8 + $0x28] sm:$0xff] %v783_v16   ;;  %v592_v20 = vmul.f32 %v576_v38, %v1188_v50 }
 0x2c1   :  { %v579_v22 = vmul.f32 0.8944272, %v953_v18 }
 0x2c2   :  { %v955_v24 = vpop.eup %954  ;;  %v778_v25 = vpack.c.bf16 %v592_v20, %v591_v17 }
 0x2c3   :  { %v580_v27 = vmul.f32 0.8944272, %v955_v24  ;;  %v595_v28 = vmul.f32 %v579_v22, %v1196_v56 }
 0x2c4   :  { %v957_v42 = vpop.eup %956  ;;  %798 = vst [vmem:[#allocation8 + $0x20] sm:$0xff] %v778_v25  }
 0x2c5   :  { %v596_v46 = vmul.f32 %v580_v27, %v1200_v60  ;;  %v581_v29 = vmul.f32 0.8944272, %v957_v42 }
 0x2c6   :  { %v959_v30 = vpop.eup %958 }
 0x2c7   :  { %v788_v32 = vpack.c.bf16 %v596_v46, %v595_v28  ;;  %v582_v33 = vmul.f32 0.8944272, %v959_v30  ;;  %v597_v49 = vmul.f32 %v581_v29, %v1198_v59 }
 0x2c9   :  { %800 = vst [vmem:[#allocation8 + $0x30] sm:$0xff] %v788_v32   ;;  %v598_v50 = vmul.f32 %v582_v33, %v1204_v62 }
 0x2cb   :  { %v793_v35 = vpack.c.bf16 %v598_v50, %v597_v49 }
 0x2cd   :  { %801 = vst [vmem:[#allocation8 + $0x38] sm:$0xff] %v793_v35  }
 0x2ce   :  { %1037 = shalt.err (!%p1034_p0)
}
 0x2cf   :  { %s1038_s12 = scalar_lea.hbm %s1248_s5, 1024 }
 0x2d0   :  { %p1039_p1 = scmp.ne.s32.totalorder %s1248_s5, %s1038_s12  ;;  %p1042_p2 = scmp.lt.u32.totalorder %s1038_s12, %s1248_s5 }
 0x2d2   :  { %p1044_p3 = pnand %p1042_p2, %p1039_p1 }
 0x2d4   :  { %1047 = shalt.err (!%p1044_p3)
}
 0x2d5   :  { %690 = dma.vmem_to_hbm [thread:$0]  %s685_s8, 1024, %s1248_s5, [#allocation4], %s1056_s30, %s1056_s30, %s1057_s6  }
 0x2d6   :  { %1052 = dma.done.wait [#allocation4], 1024  }
 0x2d7   :  { %1053 = vsyncadd [#allocation4], 4294966272 }
 0x2d8   :  { %694 = vsyncpa [#allocation3], 1 }
 0x2d9   :  { %695 = vsyncpa [#allocation6], 1 }
 0x2da   :  { %696 = vsyncpa [#allocation4], 1 }

</bundles_post_ra>
